<compile_context>
chip_gen: v7x
topology: tpu7x:2x2x1
jax: 0.10.0
libtpu: 0.0.40
codegen_flags: <defaults>
</compile_context>

<pallas_src>
import functools

import jax
import jax.numpy as jnp
from jax import lax
from jax.experimental import pallas as pl
from jax.experimental.pallas import tpu as pltpu


def _vmem_capacity_bytes() -> int:
    """Physical VMEM per TensorCore, with a conservative fallback."""
    try:
        info = pltpu.get_tpu_info()
        cap = getattr(info, "vmem_capacity_bytes", None)
        if cap:
            return int(cap)
    except Exception:
        pass
    return 64 * 1024 * 1024  # conservative: v7x per-TensorCore VMEM


def _num_tensorcores() -> int:
    """TensorCores per chip; split axis only pays off when > 1 (megacore)."""
    try:
        info = pltpu.get_tpu_info()
        for name in ("num_cores", "core_count", "num_tensorcores",
                     "tensor_core_count"):
            v = getattr(info, name, None)
            if isinstance(v, int) and 1 <= v <= 16:
                return v
    except Exception:
        pass
    return 1


def _contrastive_kernel(o1_ref, o2_ref, lbl_ref, out_ref, acc_ref, *,
                        margin: float, batch: int, block_rows: int,
                        base_tiles: int, split_remainder: int):
    s = pl.program_id(0)            # split index ("parallel")
    t = pl.program_id(1)            # reduction step within split ("arbitrary")
    n_t = pl.num_programs(1)

    q = base_tiles                  # each split owns >= q tiles
    r = split_remainder             # first r splits own one extra tile

    @pl.when(t == 0)
    def _init():
        acc_ref[...] = jnp.zeros_like(acc_ref)

    cnt = q + jnp.where(s < r, 1, 0)          # tiles owned by this split
    off = s * q + jnp.minimum(s, r)           # first tile of this split
    tile = off + jnp.minimum(t, cnt - 1)      # clamped inside own range

    @pl.when(t < cnt)                          # skip clamped duplicate steps
    def _step():
        eps = jnp.float32(1e-6)   # pairwise_distance default (added to diff)
        o1 = o1_ref[...].astype(jnp.float32)
        o2 = o2_ref[...].astype(jnp.float32)
        diff = o1 - o2 + eps                                    # (tb, D)
        sq = jnp.sum(diff * diff, axis=-1, keepdims=True)       # (tb, 1)

        # Mask tail rows of the true last tile (B not a multiple of tb).
        row = lax.broadcasted_iota(jnp.int32, sq.shape, 0)
        sq = jnp.where(tile * block_rows + row < batch, sq, 0.0)

        d = jnp.sqrt(sq)                                        # EUP
        hinge = jnp.maximum(jnp.float32(margin) - d, 0.0)
        adj = hinge * hinge - sq                                # (tb, 1)

        lbl = lbl_ref[0]                                        # (1, tb) lane-dense
        # sum_rows[(1-l)*d^2 + l*hinge^2] = sum(sq) + lbl @ (hinge^2 - sq)
        label_term = jnp.dot(lbl.astype(jnp.float32), adj,
                             precision=lax.Precision.HIGHEST,
                             preferred_element_type=jnp.float32)  # (1, 1)
        acc_ref[...] += jnp.sum(sq, keepdims=True) + label_term

    @pl.when(t == n_t - 1)
    def _store():
        # Single lane-dense (8,128) store; wrapper reads [0, 0] of each block.
        out_ref[...] = jnp.broadcast_to(acc_ref[...], out_ref.shape)


def contrastive_loss(output1, output2, label, margin: float = 1.0,
                     num_splits: int | None = None,
                     block_rows: int | None = None):
    """output1/output2: (B, D); label: (B,). Returns scalar f32 loss."""
    assert output1.shape == output2.shape
    B, D = output1.shape
    in_itemsize = jnp.dtype(output1.dtype).itemsize

    # --- Generation-aware VMEM budget ------------------------------------
    vmem_cap = _vmem_capacity_bytes()
    vmem_limit = (vmem_cap * 3) // 4           # explicit scoped limit w/ headroom

    if block_rows is not None:                 # explicit override (tests)
        tb = max(8, (int(block_rows) // 8) * 8)
    else:
        # Bytes resident in VMEM per tile row:
        #   2 inputs x 2 pipeline buffers (input dtype)
        #   + ~4 f32-sized temporaries (upcast/diff/square) the compiler may
        #     keep live, + 2 lane-dense label buffers padded to 8 sublanes.
        per_row_bytes = D * (4 * in_itemsize + 4 * 4) + 64
        budget = max(vmem_limit - 2 * 1024 * 1024, 1 * 1024 * 1024)
        tb = max(8, ((budget // per_row_bytes) // 8) * 8)
        # TODO(synk): add a D-tiling fallback (second reduction axis over D)
        # for very wide embeddings where even an (8, D) block busts VMEM.
    if B <= tb:
        tb = B                                  # single tile covers the batch

    total_tiles = pl.cdiv(B, tb)

    # --- Split axis: only > 1 on multi-TensorCore (megacore) chips --------
    if num_splits is None:
        num_splits = min(_num_tensorcores(), 2)
    ns = max(1, min(int(num_splits), total_tiles))
    q, r = divmod(total_tiles, ns)              # exact per-split tile ranges
    t_per_split = q + (1 if r else 0)

    # --- Lane-dense label: one contiguous (1, tb) row per tile ------------
    padded = total_tiles * tb
    lbl = jnp.pad(label.astype(jnp.float32).reshape(-1), (0, padded - B))
    lbl = lbl.reshape(total_tiles, 1, tb)

    def tile_idx(s, t):
        cnt = q + jnp.where(s < r, 1, 0)
        off = s * q + jnp.minimum(s, r)
        return off + jnp.minimum(t, cnt - 1)    # clamp -> same index -> no re-DMA

    def emb_map(s, t):
        return (tile_idx(s, t), 0)

    def lbl_map(s, t):
        return (tile_idx(s, t), 0, 0)

    kernel = functools.partial(
        _contrastive_kernel, margin=float(margin), batch=B, block_rows=tb,
        base_tiles=q, split_remainder=r)

    cost = pl.CostEstimate(
        flops=4 * B * D + 10 * B,
        transcendentals=B,
        bytes_accessed=2 * B * D * in_itemsize + padded * 4 + ns * 8 * 128 * 4)

    partials = pl.pallas_call(
        kernel,
        out_shape=jax.ShapeDtypeStruct((8 * ns, 128), jnp.float32),
        grid_spec=pltpu.PrefetchScalarGridSpec(
            num_scalar_prefetch=0,
            grid=(ns, t_per_split),
            in_specs=[
                pl.BlockSpec((tb, D), emb_map),
                pl.BlockSpec((tb, D), emb_map),
                pl.BlockSpec((1, 1, tb), lbl_map),
            ],
            out_specs=pl.BlockSpec((8, 128), lambda s, t: (s, 0)),
            scratch_shapes=[pltpu.VMEM((1, 1), jnp.float32)],
        ),
        compiler_params=pltpu.CompilerParams(
            dimension_semantics=("parallel", "arbitrary"),
            vmem_limit_bytes=int(vmem_limit)),
        cost_estimate=cost,
    )(output1, output2, lbl)

    # One representative element per split block; divide by the true batch.
    total = jnp.sum(partials[::8, 0])
    return total / jnp.float32(B)


def _reference(output1, output2, label, margin=1.0):
    eps = 1e-6
    d = jnp.sqrt(jnp.sum((output1 - output2 + eps) ** 2, axis=-1))
    hinge = jnp.maximum(margin - d, 0.0)
    return jnp.mean((1.0 - label) * d**2 + label * hinge**2)


if __name__ == "__main__":
    key = jax.random.PRNGKey(0)
    k1, k2, k3, k4, k5, k6 = jax.random.split(key, 6)

    # Test 1: small embedding pairs, single tile.
    B, D = 8, 32
    output1 = jax.random.normal(k1, (B, D), dtype=jnp.float32)
    output2 = jax.random.normal(k2, (B, D), dtype=jnp.float32)
    label = jax.random.bernoulli(k3, 0.5, (B,)).astype(jnp.float32)

    loss = contrastive_loss(output1, output2, label, margin=1.0)
    jax.block_until_ready(loss)
    ref = _reference(output1, output2, label, margin=1.0)
    assert jnp.allclose(loss, ref, rtol=1e-5, atol=1e-5), (loss, ref)

    # Test 2: multi-tile path with ragged batch, forced tiny tiles, 2 splits
    # (exercises exact per-split ranges, duplicate-step skip, tail masking,
    #  and an active hinge branch via a larger margin).
    B2, D2 = 20, 32
    o1b = jax.random.normal(k4, (B2, D2), dtype=jnp.float32)
    o2b = jax.random.normal(k5, (B2, D2), dtype=jnp.float32)
    lblb = jax.random.bernoulli(k6, 0.5, (B2,)).astype(jnp.float32)

    loss2 = contrastive_loss(o1b, o2b, lblb, margin=10.0,
                             num_splits=2, block_rows=8)
    jax.block_until_ready(loss2)
    ref2 = _reference(o1b, o2b, lblb, margin=10.0)
    assert jnp.allclose(loss2, ref2, rtol=1e-5, atol=1e-5), (loss2, ref2)

    print("KERNEL_OK")
</pallas_src>

<mosaic_0001>
module attributes {stable_mosaic.version = 11 : i64} {
  func.func @_contrastive_kernel(%arg0: i32, %arg1: i32, %arg2: memref<8x32xf32, #tpu.memory_space<vmem>>, %arg3: memref<8x32xf32, #tpu.memory_space<vmem>>, %arg4: memref<1x1x8xf32, #tpu.memory_space<vmem>>, %arg5: memref<8x128xf32, #tpu.memory_space<vmem>>, %arg6: memref<1x1xf32, #tpu.memory_space<vmem>>) attributes {dimension_semantics = [#tpu.dimension_semantics<parallel>, #tpu.dimension_semantics<arbitrary>], iteration_bounds = array<i64: 1, 1>, scalar_prefetch = 0 : i64, scratch_operands = 1 : i64, tpu.core_type = #tpu.core_type<tc>, window_params = [{transform_indices = @transform_0, window_bounds = array<i64: 8, 32>}, {transform_indices = @transform_1, window_bounds = array<i64: 8, 32>}, {transform_indices = @transform_2, window_bounds = array<i64: 1, 1, 8>}, {transform_indices = @transform_3, window_bounds = array<i64: 8, 128>}]} {
    %c0_i32 = arith.constant 0 : i32
    %0 = arith.cmpi eq, %arg1, %c0_i32 : i32
    %1 = arith.extui %0 : i1 to i32
    %c0_i32_0 = arith.constant 0 : i32
    %2 = arith.cmpi ne, %1, %c0_i32_0 : i32
    scf.if %2 {
      %cst = arith.constant 0.000000e+00 : f32
      %18 = vector.broadcast %cst : f32 to vector<1x1xf32>
      %c0 = arith.constant 0 : index
      %c0_10 = arith.constant 0 : index
      %19 = vector.load %arg6[%c0, %c0_10] : memref<1x1xf32, #tpu.memory_space<vmem>>, vector<1x1xf32>
      tpu.vector_store %arg6[%c0, %c0_10], %18 {strides = array<i32>} : memref<1x1xf32, #tpu.memory_space<vmem>>, vector<1x1xf32>,
    } else {
    }
    %c0_i32_1 = arith.constant 0 : i32
    %3 = arith.cmpi slt, %arg0, %c0_i32_1 : i32
    %c1_i32 = arith.constant 1 : i32
    %c0_i32_2 = arith.constant 0 : i32
    %4 = arith.select %3, %c1_i32, %c0_i32_2 : i32
    %c1_i32_3 = arith.constant 1 : i32
    %5 = arith.addi %c1_i32_3, %4 : i32
    %c1_i32_4 = arith.constant 1 : i32
    %6 = arith.muli %arg0, %c1_i32_4 : i32
    %c0_i32_5 = arith.constant 0 : i32
    %7 = arith.minsi %arg0, %c0_i32_5 : i32
    %8 = arith.addi %6, %7 : i32
    %c1_i32_6 = arith.constant 1 : i32
    %9 = arith.subi %5, %c1_i32_6 : i32
    %10 = arith.minsi %arg1, %9 : i32
    %11 = arith.addi %8, %10 : i32
    %12 = arith.cmpi slt, %arg1, %5 : i32
    %13 = arith.extui %12 : i1 to i32
    %c0_i32_7 = arith.constant 0 : i32
    %14 = arith.cmpi ne, %13, %c0_i32_7 : i32
    scf.if %14 {
      %c0 = arith.constant 0 : index
      %c0_10 = arith.constant 0 : index
      %18 = vector.load %arg2[%c0, %c0_10] : memref<8x32xf32, #tpu.memory_space<vmem>>, vector<8x32xf32>
      %c0_11 = arith.constant 0 : index
      %c0_12 = arith.constant 0 : index
      %19 = vector.load %arg3[%c0_11, %c0_12] : memref<8x32xf32, #tpu.memory_space<vmem>>, vector<8x32xf32>
      %20 = arith.subf %18, %19 : vector<8x32xf32>
      %cst = arith.constant 9.99999997E-7 : f32
      %21 = vector.broadcast %cst : f32 to vector<8x32xf32>
      %22 = arith.addf %20, %21 : vector<8x32xf32>
      %23 = arith.mulf %22, %22 : vector<8x32xf32>
      %cst_13 = arith.constant dense<0.000000e+00> : vector<8xf32>
      %24 = vector.multi_reduction <add>, %23, %cst_13 [1] : vector<8x32xf32> to vector<8xf32>
      %25 = vector.shape_cast %24 : vector<8xf32> to vector<8x1xf32>
      %26 = tpu.iota {dimensions = array<i32: 0>} : vector<8x1xi32>
      %c8_i32 = arith.constant 8 : i32
      %27 = arith.muli %11, %c8_i32 : i32
      %28 = vector.broadcast %27 : i32 to vector<8x1xi32>
      %29 = arith.addi %28, %26 : vector<8x1xi32>
      %c8_i32_14 = arith.constant 8 : i32
      %30 = vector.broadcast %c8_i32_14 : i32 to vector<8x1xi32>
      %31 = arith.cmpi slt, %29, %30 : vector<8x1xi32>
      %cst_15 = arith.constant 0.000000e+00 : f32
      %32 = vector.broadcast %cst_15 : f32 to vector<8x1xf32>
      %33 = arith.select %31, %25, %32 : vector<8x1xi1>, vector<8x1xf32>
      %34 = math.sqrt %33 : vector<8x1xf32>
      %cst_16 = arith.constant 1.000000e+00 : f32
      %35 = vector.broadcast %cst_16 : f32 to vector<8x1xf32>
      %36 = arith.subf %35, %34 : vector<8x1xf32>
      %cst_17 = arith.constant 0.000000e+00 : f32
      %37 = vector.broadcast %cst_17 : f32 to vector<8x1xf32>
      %38 = arith.maximumf %36, %37 : vector<8x1xf32>
      %39 = arith.mulf %38, %38 : vector<8x1xf32>
      %40 = arith.subf %39, %33 : vector<8x1xf32>
      %c0_18 = arith.constant 0 : index
      %c0_19 = arith.constant 0 : index
      %c0_20 = arith.constant 0 : index
      %41 = vector.load %arg4[%c0_18, %c0_19, %c0_20] : memref<1x1x8xf32, #tpu.memory_space<vmem>>, vector<1x1x8xf32>
      %42 = vector.shape_cast %41 : vector<1x1x8xf32> to vector<1x8xf32>
      %cst_21 = arith.constant dense<0.000000e+00> : vector<1x1xf32>
      %43 = tpu.matmul %42, %40, %cst_21 {dimension_numbers = #tpu.dot_dimension_numbers<[1], [0], [0], [1], [0, 0, 1, 1], [], []>, precision = #tpu.contract_precision<fp32>} : vector<1x8xf32>, vector<8x1xf32>, vector<1x1xf32> -> vector<1x1xf32>
      %c0_22 = arith.constant 0 : index
      %c0_23 = arith.constant 0 : index
      %44 = vector.load %arg6[%c0_22, %c0_23] : memref<1x1xf32, #tpu.memory_space<vmem>>, vector<1x1xf32>
      %45 = vector.shape_cast %33 : vector<8x1xf32> to vector<1x8x1xf32>
      %cst_24 = arith.constant dense<0.000000e+00> : vector<1xf32>
      %46 = vector.multi_reduction <add>, %45, %cst_24 [1, 2] : vector<1x8x1xf32> to vector<1xf32>
      %47 = vector.shape_cast %46 : vector<1xf32> to vector<1x1x1xf32>
      %48 = vector.extract %47[0, 0, 0] : f32 from vector<1x1x1xf32>
      %49 = vector.broadcast %48 : f32 to vector<1x1xf32>
      %50 = arith.addf %49, %43 : vector<1x1xf32>
      %51 = arith.addf %44, %50 : vector<1x1xf32>
      %c0_25 = arith.constant 0 : index
      %c0_26 = arith.constant 0 : index
      %52 = vector.load %arg6[%c0_25, %c0_26] : memref<1x1xf32, #tpu.memory_space<vmem>>, vector<1x1xf32>
      tpu.vector_store %arg6[%c0_25, %c0_26], %51 {strides = array<i32>} : memref<1x1xf32, #tpu.memory_space<vmem>>, vector<1x1xf32>,
    } else {
    }
    %c0_i32_8 = arith.constant 0 : i32
    %15 = arith.cmpi eq, %arg1, %c0_i32_8 : i32
    %16 = arith.extui %15 : i1 to i32
    %c0_i32_9 = arith.constant 0 : i32
    %17 = arith.cmpi ne, %16, %c0_i32_9 : i32
    scf.if %17 {
      %c0 = arith.constant 0 : index
      %c0_10 = arith.constant 0 : index
      %18 = vector.load %arg6[%c0, %c0_10] : memref<1x1xf32, #tpu.memory_space<vmem>>, vector<1x1xf32>
      %19 = vector.shape_cast %18 : vector<1x1xf32> to vector<1x1xf32>
      %20 = vector.broadcast %19 : vector<1x1xf32> to vector<8x128xf32>
      %c0_11 = arith.constant 0 : index
      %c0_12 = arith.constant 0 : index
      %21 = vector.load %arg5[%c0_11, %c0_12] : memref<8x128xf32, #tpu.memory_space<vmem>>, vector<8x128xf32>
      tpu.vector_store %arg5[%c0_11, %c0_12], %20 {strides = array<i32>} : memref<8x128xf32, #tpu.memory_space<vmem>>, vector<8x128xf32>,
    } else {
    }
    return
  }
  func.func @transform_0(%arg0: i32, %arg1: i32) -> (i32, i32) {
    %c0_i32 = arith.constant 0 : i32
    %0 = arith.cmpi slt, %arg0, %c0_i32 : i32
    %c1_i32 = arith.constant 1 : i32
    %c0_i32_0 = arith.constant 0 : i32
    %1 = arith.select %0, %c1_i32, %c0_i32_0 : i32
    %c1_i32_1 = arith.constant 1 : i32
    %2 = arith.addi %c1_i32_1, %1 : i32
    %c1_i32_2 = arith.constant 1 : i32
    %3 = arith.muli %arg0, %c1_i32_2 : i32
    %c0_i32_3 = arith.constant 0 : i32
    %4 = arith.minsi %arg0, %c0_i32_3 : i32
    %5 = arith.addi %3, %4 : i32
    %c1_i32_4 = arith.constant 1 : i32
    %6 = arith.subi %2, %c1_i32_4 : i32
    %7 = arith.minsi %arg1, %6 : i32
    %8 = arith.addi %5, %7 : i32
    %c0_i32_5 = arith.constant 0 : i32
    %c0_i32_6 = arith.constant 0 : i32
    return %8, %c0_i32_5 : i32, i32
  }
  func.func @transform_1(%arg0: i32, %arg1: i32) -> (i32, i32) {
    %c0_i32 = arith.constant 0 : i32
    %0 = arith.cmpi slt, %arg0, %c0_i32 : i32
    %c1_i32 = arith.constant 1 : i32
    %c0_i32_0 = arith.constant 0 : i32
    %1 = arith.select %0, %c1_i32, %c0_i32_0 : i32
    %c1_i32_1 = arith.constant 1 : i32
    %2 = arith.addi %c1_i32_1, %1 : i32
    %c1_i32_2 = arith.constant 1 : i32
    %3 = arith.muli %arg0, %c1_i32_2 : i32
    %c0_i32_3 = arith.constant 0 : i32
    %4 = arith.minsi %arg0, %c0_i32_3 : i32
    %5 = arith.addi %3, %4 : i32
    %c1_i32_4 = arith.constant 1 : i32
    %6 = arith.subi %2, %c1_i32_4 : i32
    %7 = arith.minsi %arg1, %6 : i32
    %8 = arith.addi %5, %7 : i32
    %c0_i32_5 = arith.constant 0 : i32
    %c0_i32_6 = arith.constant 0 : i32
    return %8, %c0_i32_5 : i32, i32
  }
  func.func @transform_2(%arg0: i32, %arg1: i32) -> (i32, i32, i32) {
    %c0_i32 = arith.constant 0 : i32
    %0 = arith.cmpi slt, %arg0, %c0_i32 : i32
    %c1_i32 = arith.constant 1 : i32
    %c0_i32_0 = arith.constant 0 : i32
    %1 = arith.select %0, %c1_i32, %c0_i32_0 : i32
    %c1_i32_1 = arith.constant 1 : i32
    %2 = arith.addi %c1_i32_1, %1 : i32
    %c1_i32_2 = arith.constant 1 : i32
    %3 = arith.muli %arg0, %c1_i32_2 : i32
    %c0_i32_3 = arith.constant 0 : i32
    %4 = arith.minsi %arg0, %c0_i32_3 : i32
    %5 = arith.addi %3, %4 : i32
    %c1_i32_4 = arith.constant 1 : i32
    %6 = arith.subi %2, %c1_i32_4 : i32
    %7 = arith.minsi %arg1, %6 : i32
    %8 = arith.addi %5, %7 : i32
    %c0_i32_5 = arith.constant 0 : i32
    %c0_i32_6 = arith.constant 0 : i32
    %c0_i32_7 = arith.constant 0 : i32
    return %8, %c0_i32_5, %c0_i32_6 : i32, i32, i32
  }
  func.func @transform_3(%arg0: i32, %arg1: i32) -> (i32, i32) {
    %c0_i32 = arith.constant 0 : i32
    %c0_i32_0 = arith.constant 0 : i32
    return %arg0, %c0_i32 : i32, i32
  }
}

</mosaic_0001>

<bundles_post_ra>
// kernel: tpu_custom_call.1
= control target key start
LH: loop header
LB: loop body
LE: loop exit
PB: predicated region body
PF: predicated region fallthrough
CT: control target
= control target key end

     0   :  { %8 = vsyncpa [#allocation4], 0  ;;  %s855_s0 = inlined_call_operand.hbm [shape: f32[8,32], index: 0, kind: input, shape index: {}]   ;;  %s856_s1 = inlined_call_operand.hbm [shape: f32[8,32], index: 1, kind: input, shape index: {}]   ;;  %s857_s2 = inlined_call_operand.vmem [shape: f32[1,1,8], index: 2, kind: input, shape index: {}]   ;;  %s858_s3 = inlined_call_operand.hbm [shape: f32[8,128], index: 3, kind: output, shape index: {}]  }
   0x1   :  { %9 = vsyncpa [#allocation7], 0 }
   0x2   :  { %10 = vsyncpa [#allocation5], 0  ;;  %s782_s12 = smov [#allocation3]   ;;  %s783_s14 = smov [#allocation6]  }
   0x3   :  { %s25_s13 = sshll.u32 %s782_s12, 4  ;;  %s43_s15 = sshll.u32 %s783_s14, 4  ;;  %s26_s13 = int_to_ptr.vmem [resolvable:$true] %s25_s13  ;;  %s44_s15 = int_to_ptr.vmem [resolvable:$true] %s43_s15 }
   0x4   :  { %s710_s18 = scalar_lea.hbm %s855_s0, 128 }
   0x5   :  { %p711_p0 = scmp.ne.s32.totalorder %s855_s0, %s710_s18  ;;  %p714_p1 = scmp.lt.u32.totalorder %s710_s18, %s855_s0 }
   0x7   :  { %p716_p2 = pnand %p714_p1, %p711_p0 }
   0x9   :  { %719 = shalt.err (!%p716_p2)
}
   0xa   :  { %s720_s23 = scalar_lea.vmem %s26_s13, 128  ;;  %p725_p4 = scmp.lt.s32.totalorder %s26_s13, %s26_s13 }
   0xb   :  { %p721_p3 = scmp.ne.s32.totalorder %s26_s13, %s720_s23  ;;  %p726_p5 = scmp.lt.s32.totalorder %s720_s23, %s720_s23 }
   0xd   :  { %p727_p6 = por %p726_p5, %p725_p4 }
   0xf   :  { %p728_p7 = pnand %p727_p6, %p721_p3 }
  0x11   :  { %731 = shalt.err (!%p728_p7)
}
  0x12   :  { %28 = dma.hbm_to_vmem [thread:$0]  %s855_s0, 128, %s26_s13, [#allocation4]  }
  0x13   :  { %s732_s28 = scalar_lea.hbm %s856_s1, 128 }
  0x14   :  { %p733_p8 = scmp.ne.s32.totalorder %s856_s1, %s732_s28  ;;  %p736_p9 = scmp.lt.u32.totalorder %s732_s28, %s856_s1 }
  0x16   :  { %p738_p10 = pnand %p736_p9, %p733_p8 }
  0x18   :  { %741 = shalt.err (!%p738_p10)
}
  0x19   :  { %s742_s6 = scalar_lea.vmem %s44_s15, 128  ;;  %p747_p12 = scmp.lt.s32.totalorder %s44_s15, %s44_s15 }
  0x1a   :  { %p743_p11 = scmp.ne.s32.totalorder %s44_s15, %s742_s6  ;;  %p748_p13 = scmp.lt.s32.totalorder %s742_s6, %s742_s6 }
  0x1c   :  { %p749_p0 = por %p748_p13, %p747_p12 }
  0x1e   :  { %p750_p1 = pnand %p749_p0, %p743_p11 }
  0x20   :  { %753 = shalt.err (!%p750_p1)
}
  0x21   :  { %46 = dma.hbm_to_vmem [thread:$0]  %s856_s1, 128, %s44_s15, [#allocation7]  }
  0x22   :  { %776 = dma.done.wait [#allocation4], 128  }
  0x23   :  { %777 = vsyncadd [#allocation4], 4294967168 }
  0x24   :  { %778 = dma.done.wait [#allocation7], 128  }
  0x25   :  { %779 = vsyncadd [#allocation7], 4294967168  ;;  %v123_v0 = vld [vmem:[#allocation3] sm:$0xff]  ;;  %v124_v1 = vld [vmem:[#allocation6] sm:$0xff]  ;;  %vm128_vm0 = vcmask 261120   ;;  %v784_v6 = vmov 0.0  }
  0x26   :  { %v125_v2 = vsub.f32 %v123_v0, %v124_v1  ;;  %668 = vmatprep.subr.mxu0 %v784_v6  ;;  %673 = vmatprep.subr.mxu1 %v784_v6  ;;  %vm785_vm1 = vmmov 0   ;;  %vm602_vm2 = vcmask 7168   ;;  %v150_v9 = vld [vmem:[%s857_s2] sm:$0x1]  ;;  %vm151_vm3 = vcmask 64512   ;;  %s787_s9 = smov [#allocation8]  }
  0x27   :  { %670 = vmatprep.mubr.msk.f32.mxu0 %vm785_vm1, %v784_v6  ;;  %675 = vmatprep.mubr.msk.f32.mxu1 %vm785_vm1, %v784_v6  ;;  %v153_v10 = vsel %vm151_vm3, %v150_v9, 0  ;;  %vm110_vm6 = vcmask 0   ;;  %v786_v30 = vmov 0   ;;  %s638_s10 = sshll.u32 %s787_s9, 4  ;;  %s639_s10 = int_to_ptr.vmem [resolvable:$true] %s638_s10 }
  0x28   :  { %v126_v3 = vadd.f32 1e-06, %v125_v2  ;;  %v221_v11 = vand.u32 4294901760, %v153_v10  ;;  %111 = vst.msk [vmem:[#allocation2] sm:$0x1] %vm110_vm6, %v784_v6  ;;  %706 = vset.pattern.permute.xlu1 %v786_v30  ;;  %707 = vset.pattern.permute.xlu0 %v786_v30  ;;  %s754_s11 = scalar_lea.vmem %s639_s10, 128  ;;  %p759_p3 = scmp.lt.s32.totalorder %s639_s10, %s639_s10 }
  0x29   :  { %p755_p2 = scmp.ne.s32.totalorder %s639_s10, %s754_s11  ;;  %p760_p4 = scmp.lt.s32.totalorder %s754_s11, %s754_s11 }
  0x2a   :  { %v127_v4 = vmul.f32 %v126_v3, %v126_v3  ;;  %v222_v13 = vsub.f32 %v153_v10, %v221_v11 }
  0x2b   :  { %p761_p5 = por %p760_p4, %p759_p3 }
  0x2c   :  { %v129_v5 = vsel %vm128_vm0, %v127_v4, 0.0  ;;  %v223_v18 = vand.u32 4294901760, %v222_v13 }
  0x2d   :  { %130 = vadd.xlane.f32.xlu0 %v129_v5  ;;  %p762_p6 = pnand %p761_p5, %p755_p2 }
  0x2e   :  { %v224_v21 = vsub.f32 %v222_v13, %v223_v18 }
  0x2f   :  { %v601_v56 = vld [vmem:[#allocation2] sm:$0x1] }
  0x30   :  { %v225_v24 = vand.u32 4294901760, %v224_v21 }
  0xba   :  { %v131_v7 = vpop.xlane.xlu0 %130 }
  0xbb   :  { %708 = vrsqrt.f32 %v131_v7  ;;  %v603_v8 = vsel %vm602_vm2, %v131_v7, 0.0  ;;  %vm141_vm4 = vcmp.eq.f32.partialorder %v131_v7, inf  ;;  %v144_v15 = vand.u32 2147483648, %v131_v7 }
  0xbc   :  { %604 = vadd.xlane.f32.xlu0 %v603_v8  ;;  %vm143_vm5 = vcmp.eq.f32.partialorder %v131_v7, 0.0 }
  0xc5   :  { %v709_v12 = vpop.eup %708 }
  0xc6   :  { %v140_v14 = vmul.f32 %v709_v12, %v131_v7 }
  0xc8   :  { %v142_v16 = vsel %vm141_vm4, %v131_v7, %v140_v14 }
  0xc9   :  { %v145_v17 = vsel %vm143_vm5, %v144_v15, %v142_v16 }
  0xca   :  { %v146_v19 = vsub.f32 1.0, %v145_v17 }
  0xcc   :  { %v147_v20 = vmax.f32 %v146_v19, 0.0 }
  0xce   :  { %v148_v22 = vmul.f32 %v147_v20, %v147_v20 }
  0xd0   :  { %v149_v23 = vsub.f32 %v148_v22, %v131_v7 }
  0xd2   :  { %v156_v25 = vand.u32 4294901760, %v149_v23 }
  0xd4   :  { %669 = vmatpush3.msra.mxu0 %v156_v25  ;;  %v233_v26 = vsub.f32 %v149_v23, %v156_v25 }
  0xd5   :  { %671 = vmatmul.mubr.f32.vlgmr.msra.gmra.mrb[0].mxu0 %v225_v24  ;;  %678 = vmatprep.subr.mxu0 %v784_v6 }
  0xd6   :  { %679 = vmatpush3.msra.mxu0 %v233_v26  ;;  %680 = vmatprep.mubr.msk.f32.mxu0 %vm785_vm1, %v784_v6  ;;  %v234_v27 = vand.u32 4294901760, %v233_v26 }
  0xd7   :  { %688 = vmatprep.subr.mxu0 %v784_v6 }
  0xd8   :  { %v235_v28 = vsub.f32 %v233_v26, %v234_v27 }
  0xd9   :  { %681 = vmatmul.mubr.f32.vlgmr.msra.gmra.mrb[2].mxu0 %v222_v13 }
  0xda   :  { %689 = vmatpush3.msra.mxu0 %v234_v27  ;;  %v236_v29 = vand.u32 4294901760, %v235_v28  ;;  %690 = vmatprep.mubr.msk.f32.mxu0 %vm785_vm1, %v784_v6 }
  0xdc   :  { %674 = vmatpush3.msra.mxu1 %v236_v29 }
  0xdd   :  { %676 = vmatmul.mubr.f32.vlgmr.msra.gmra.mrb[0].mxu1 %v221_v11  ;;  %683 = vmatprep.subr.mxu1 %v784_v6 }
  0xde   :  { %684 = vmatpush3.msra.mxu1 %v156_v25  ;;  %685 = vmatprep.mubr.msk.f32.mxu1 %vm785_vm1, %v784_v6 }
  0xdf   :  { %693 = vmatprep.subr.mxu1 %v784_v6  ;;  %691 = vmatmul.mubr.f32.vlgmr.msra.gmra.mrb[4].mxu0 %v221_v11 }
  0xe1   :  { %686 = vmatmul.mubr.f32.vlgmr.msra.gmra.mrb[2].mxu1 %v223_v18 }
  0xe2   :  { %694 = vmatpush3.msra.mxu1 %v156_v25  ;;  %695 = vmatprep.mubr.msk.f32.mxu1 %vm785_vm1, %v784_v6 }
  0xe5   :  { %696 = vmatmul.mubr.f32.vlgmr.msra.gmra.mrb[4].mxu1 %v221_v11 }
 0x149   :  { %v605_v31 = vpop.xlane.xlu0 %604 }
 0x14a   :  { %v606_v32 = vrot.slane %v605_v31, 4 }
 0x14c   :  { %v607_v33 = vadd.f32 %v606_v32, %v605_v31 }
 0x14e   :  { %v608_v34 = vrot.slane %v607_v33, 2 }
 0x150   :  { %v609_v35 = vadd.f32 %v608_v34, %v607_v33 }
 0x152   :  { %v610_v36 = vrot.slane %v609_v35, 1 }
 0x154   :  { %v611_v37 = vadd.f32 %v610_v36, %v609_v35 }
 0x156   :  { %698 = vpush %v611_v37 }
 0x187   :  { %s699_s2 = spop %698 }
 0x188   :  { %v613_v55 = vstv %s699_s2 }
 0x1a8   :  { %v227_v38 = vpop.f32.mrb[0].mxu0 }
 0x1a9   :  { %v672_v39 = vpop.f32.mrb[1].mxu0 }
 0x1ac   :  { %v377_v40 = vpop.f32.mrb[2].mxu0 }
 0x1ad   :  { %v682_v41 = vpop.f32.mrb[3].mxu0 }
 0x1b0   :  { %v303_v42 = vpop.f32.mrb[0].mxu1 }
 0x1b1   :  { %v304_v43 = vadd.f32 %v303_v42, %v227_v38  ;;  %v677_v44 = vpop.f32.mrb[1].mxu1 }
 0x1b2   :  { %v525_v45 = vpop.f32.mrb[4].mxu0 }
 0x1b3   :  { %v378_v46 = vadd.f32 %v377_v40, %v304_v43  ;;  %v692_v47 = vpop.f32.mrb[5].mxu0 }
 0x1b4   :  { %v451_v48 = vpop.f32.mrb[2].mxu1 }
 0x1b5   :  { %v452_v49 = vadd.f32 %v451_v48, %v378_v46  ;;  %v687_v50 = vpop.f32.mrb[3].mxu1 }
 0x1b7   :  { %v526_v51 = vadd.f32 %v525_v45, %v452_v49 }
 0x1b8   :  { %v597_v52 = vpop.f32.mrb[4].mxu1 }
 0x1b9   :  { %v598_v53 = vadd.f32 %v597_v52, %v526_v51  ;;  %v697_v54 = vpop.f32.mrb[5].mxu1 }
 0x1bb   :  { %v614_v57 = vadd.f32 %v613_v55, %v598_v53 }
 0x1bd   :  { %v615_v58 = vadd.f32 %v614_v57, %v601_v56 }
 0x1bf   :  { %617 = vst.msk [vmem:[#allocation2] sm:$0x1] %vm110_vm6, %v615_v58 }
 0x1c6   :  { %v655_v59 = vld [vmem:[#allocation2] ss:$0 sm:$0xff] }
 0x1c7   :  { %628 = vperm.xlu1 %706, %v655_v59  }
 0x246   :  { %v629_v60 = vpop.permute.xlu1 %628 }
 0x247   :  { %631 = vst [vmem:[#allocation8] sm:$0xff] %v629_v60 }
 0x248   :  { %765 = shalt.err (!%p762_p6)
}
 0x249   :  { %s766_s14 = scalar_lea.hbm %s858_s3, 128 }
 0x24a   :  { %p767_p7 = scmp.ne.s32.totalorder %s858_s3, %s766_s14  ;;  %p770_p8 = scmp.lt.u32.totalorder %s766_s14, %s858_s3 }
 0x24c   :  { %p772_p9 = pnand %p770_p8, %p767_p7 }
 0x24e   :  { %775 = shalt.err (!%p772_p9)
}
 0x24f   :  { %641 = dma.vmem_to_hbm [thread:$0]  %s639_s10, 128, %s858_s3, [#allocation5]  }
 0x250   :  { %780 = dma.done.wait [#allocation5], 128  }
 0x251   :  { %781 = vsyncadd [#allocation5], 4294967168 }
 0x252   :  { %645 = vsyncpa [#allocation4], 1 }
 0x253   :  { %646 = vsyncpa [#allocation7], 1 }
 0x254   :  { %647 = vsyncpa [#allocation5], 1 }

</bundles_post_ra>
